<compile_context>
chip_gen: v6e
topology: v6e:2x2x1
jax: 0.10.0
libtpu: 0.0.40
codegen_flags: <defaults>
</compile_context>

<pallas_src>
import functools

import jax
import jax.numpy as jnp
from jax import lax
from jax.experimental import pallas as pl
from jax.experimental.pallas import tpu as pltpu

_MIB = 1024 * 1024


def _round_down(x, m):
    return (x // m) * m


def _round_up(x, m):
    return ((x + m - 1) // m) * m


def _vmem_limit_bytes():
    """Per-generation scoped-VMEM limit: ~75% of physical VMEM.
    128 MiB chips (v5e/v6e) -> 96 MiB;  64 MiB chips (v7x) -> 48 MiB."""
    cap = 128 * _MIB
    try:
        info = pltpu.get_tpu_info()
        c = getattr(info, "vmem_capacity_bytes", None)
        if c:
            cap = int(c)
    except Exception:
        pass
    return int(min(100 * _MIB, max(32 * _MIB, (cap * 3) // 4)))


# --------------------------------------------------------------------------
# Kernel A: class axis fully resident (grid over batch only).
# --------------------------------------------------------------------------
def _entropy_rowwise_kernel(s1_ref, s2_ref, o_ref):
    f32 = jnp.float32
    # f32 is materialized only inside the reductions (inputs may be bf16).
    sum1 = jnp.sum(s1_ref[...].astype(f32), axis=1, keepdims=True)     # (tb,1)
    sum2 = jnp.sum(s2_ref[...].astype(f32), axis=1, keepdims=True)
    x1 = s1_ref[...].astype(f32)
    slg1 = jnp.sum(x1 * jnp.log2(x1), axis=1, keepdims=True)
    x2 = s2_ref[...].astype(f32)
    slg2 = jnp.sum(x2 * jnp.log2(x2), axis=1, keepdims=True)
    # H(s) = log2(S) - (1/S) * sum_c s*log2(s); log2(S1)+log2(S2) fused.
    # Exact divides kept (approx reciprocal would cost ~1e-3 rel. accuracy).
    ent = 0.5 * (jnp.log2(sum1 * sum2) - slg1 / sum1 - slg2 / sum2)
    o_ref[...] = ent.astype(o_ref.dtype)                                # (tb,1)


# --------------------------------------------------------------------------
# Kernel B: class-axis grid (large C) with per-row VMEM accumulators.
# --------------------------------------------------------------------------
def _entropy_kgrid_kernel(s1_ref, s2_ref, o_ref,
                          sum1_acc, sum2_acc, slg1_acc, slg2_acc,
                          *, tk, c_total, mask_tail):
    k = pl.program_id(1)

    @pl.when(k == 0)
    def _():
        sum1_acc[...] = jnp.zeros_like(sum1_acc)
        sum2_acc[...] = jnp.zeros_like(sum2_acc)
        slg1_acc[...] = jnp.zeros_like(slg1_acc)
        slg2_acc[...] = jnp.zeros_like(slg2_acc)

    f32 = jnp.float32
    s1 = s1_ref[...].astype(f32)
    s2 = s2_ref[...].astype(f32)
    sl1 = s1 * jnp.log2(s1)
    sl2 = s2 * jnp.log2(s2)
    if mask_tail:
        # Partial last K block: zero out-of-range columns so garbage never
        # contaminates the per-row sums (NaN in the unselected branch is fine).
        col = k * tk + lax.broadcasted_iota(jnp.int32, s1.shape, 1)
        valid = col < c_total
        s1 = jnp.where(valid, s1, 0.0)
        s2 = jnp.where(valid, s2, 0.0)
        sl1 = jnp.where(valid, sl1, 0.0)
        sl2 = jnp.where(valid, sl2, 0.0)

    sum1_acc[...] += jnp.sum(s1, axis=1, keepdims=True)
    sum2_acc[...] += jnp.sum(s2, axis=1, keepdims=True)
    slg1_acc[...] += jnp.sum(sl1, axis=1, keepdims=True)
    slg2_acc[...] += jnp.sum(sl2, axis=1, keepdims=True)

    @pl.when(k == pl.num_programs(1) - 1)
    def _():
        s1t = sum1_acc[...]
        s2t = sum2_acc[...]
        ent = 0.5 * (jnp.log2(s1t * s2t)
                     - slg1_acc[...] / s1t
                     - slg2_acc[...] / s2t)
        o_ref[...] = ent.astype(o_ref.dtype)


# --------------------------------------------------------------------------
# Wrapper
# --------------------------------------------------------------------------
def metric_entropy(scores1, scores2, *, tb=None, tk=None):
    """Pallas equivalent of metric_entropy.forward(). scores*: (B, C), > 0."""
    assert scores1.shape == scores2.shape and scores1.ndim == 2
    B, C = (int(d) for d in scores1.shape)
    itemsize = jnp.dtype(scores1.dtype).itemsize

    vmem_limit = _vmem_limit_bytes()
    # 2 inputs x 2 pipeline buffers + compute temporaries ~= 6 blocks.
    block_budget = min(12 * _MIB, max(1 * _MIB, vmem_limit // 6))

    cost = pl.CostEstimate(
        flops=int(6 * B * C),
        transcendentals=int(2 * B * C),
        bytes_accessed=int(2 * B * C * itemsize + B * 4),
    )

    use_kgrid = (tk is not None) or (8 * C * itemsize > block_budget)

    if not use_kgrid:
        # ---------------- resident class axis ----------------
        if tb is None:
            rows = block_budget // max(C * itemsize, 1)          # >= 8 here
            tb = min(B, max(8, _round_down(rows, 8)))
            if tb >= B and B >= 16:
                # Keep >= 2 grid steps so v7x shards across both TensorCores.
                tb = _round_up(-(-B // 2), 8)
        tb = int(min(tb, B))
        if tb < B:
            tb = max(8, _round_down(tb, 8))

        out = pl.pallas_call(
            _entropy_rowwise_kernel,
            out_shape=jax.ShapeDtypeStruct((B, 1), jnp.float32),
            grid_spec=pltpu.PrefetchScalarGridSpec(
                num_scalar_prefetch=0,
                grid=(pl.cdiv(B, tb),),
                in_specs=[
                    pl.BlockSpec((tb, C), lambda i: (i, 0)),
                    pl.BlockSpec((tb, C), lambda i: (i, 0)),
                ],
                out_specs=pl.BlockSpec((tb, 1), lambda i: (i, 0)),
            ),
            compiler_params=pltpu.CompilerParams(
                dimension_semantics=("parallel",),
                vmem_limit_bytes=vmem_limit,
            ),
            cost_estimate=cost,
        )(scores1, scores2)
        return out[:, 0]

    # ---------------- class-axis grid (large C) ----------------
    if tb is None:
        tb = min(B, 256)
    tb = int(min(tb, B))
    if tb < B:
        tb = max(8, _round_down(tb, 8))
    if tk is None:
        tk = max(128, _round_down(block_budget // max(tb * itemsize, 1), 128))
    tk = int(min(tk, C))
    mask_tail = (C % tk) != 0

    kernel = functools.partial(
        _entropy_kgrid_kernel, tk=tk, c_total=C, mask_tail=mask_tail)

    out = pl.pallas_call(
        kernel,
        out_shape=jax.ShapeDtypeStruct((B, 1), jnp.float32),
        grid_spec=pltpu.PrefetchScalarGridSpec(
            num_scalar_prefetch=0,
            grid=(pl.cdiv(B, tb), pl.cdiv(C, tk)),
            in_specs=[
                pl.BlockSpec((tb, tk), lambda i, k: (i, k)),
                pl.BlockSpec((tb, tk), lambda i, k: (i, k)),
            ],
            out_specs=pl.BlockSpec((tb, 1), lambda i, k: (i, 0)),
            scratch_shapes=[pltpu.VMEM((tb, 1), jnp.float32)] * 4,
        ),
        compiler_params=pltpu.CompilerParams(
            dimension_semantics=("parallel", "arbitrary"),
            vmem_limit_bytes=vmem_limit,
        ),
        cost_estimate=cost,
    )(scores1, scores2)
    return out[:, 0]


def _reference(scores1, scores2):
    p1 = scores1 / jnp.sum(scores1, axis=1, keepdims=True)
    p2 = scores2 / jnp.sum(scores2, axis=1, keepdims=True)
    return -jnp.sum(p1 * jnp.log2(p1) + p2 * jnp.log2(p2), axis=1) / 2.0


if __name__ == "__main__":
    key = jax.random.PRNGKey(0)
    k1, k2, k3, k4, k5, k6 = jax.random.split(key, 6)

    # 1) Small single-tile path (class axis resident).
    B, C = 8, 32
    s1 = jax.random.uniform(k1, (B, C), jnp.float32, minval=0.1, maxval=1.0)
    s2 = jax.random.uniform(k2, (B, C), jnp.float32, minval=0.1, maxval=1.0)
    out = metric_entropy(s1, s2)
    jax.block_until_ready(out)
    ref = _reference(s1, s2)
    assert out.shape == (B,)
    assert jnp.allclose(out, ref, atol=1e-4, rtol=1e-4), (out, ref)

    # 2) Batch-tiled path, non-divisible B -> partial last block, no padding.
    B2, C2 = 200, 64
    t1 = jax.random.uniform(k3, (B2, C2), jnp.float32, minval=0.1, maxval=1.0)
    t2 = jax.random.uniform(k4, (B2, C2), jnp.float32, minval=0.1, maxval=1.0)
    out2 = metric_entropy(t1, t2, tb=64)
    jax.block_until_ready(out2)
    ref2 = _reference(t1, t2)
    assert out2.shape == (B2,)
    assert jnp.allclose(out2, ref2, atol=1e-4, rtol=1e-4), (out2, ref2)

    # 3) Forced class-axis grid: partial batch AND partial (masked) K block.
    B3, C3 = 40, 320
    u1 = jax.random.uniform(k5, (B3, C3), jnp.float32, minval=0.1, maxval=1.0)
    u2 = jax.random.uniform(k6, (B3, C3), jnp.float32, minval=0.1, maxval=1.0)
    out3 = metric_entropy(u1, u2, tb=16, tk=128)
    jax.block_until_ready(out3)
    ref3 = _reference(u1, u2)
    assert out3.shape == (B3,)
    assert jnp.allclose(out3, ref3, atol=1e-4, rtol=1e-4), (out3, ref3)

    print("KERNEL_OK")
</pallas_src>

<mosaic_0001>
module attributes {stable_mosaic.version = 11 : i64} {
  func.func @_entropy_rowwise_kernel(%arg0: i32, %arg1: memref<8x32xf32, #tpu.memory_space<vmem>>, %arg2: memref<8x32xf32, #tpu.memory_space<vmem>>, %arg3: memref<8x1xf32, #tpu.memory_space<vmem>>) attributes {dimension_semantics = [#tpu.dimension_semantics<parallel>], iteration_bounds = array<i64: 1>, scalar_prefetch = 0 : i64, scratch_operands = 0 : i64, tpu.core_type = #tpu.core_type<tc>, window_params = [{transform_indices = @transform_0, window_bounds = array<i64: 8, 32>}, {transform_indices = @transform_1, window_bounds = array<i64: 8, 32>}, {transform_indices = @transform_2, window_bounds = array<i64: 8, 1>}]} {
    %c0 = arith.constant 0 : index
    %c0_0 = arith.constant 0 : index
    %0 = vector.load %arg1[%c0, %c0_0] : memref<8x32xf32, #tpu.memory_space<vmem>>, vector<8x32xf32>
    %cst = arith.constant dense<0.000000e+00> : vector<8xf32>
    %1 = vector.multi_reduction <add>, %0, %cst [1] : vector<8x32xf32> to vector<8xf32>
    %2 = vector.shape_cast %1 : vector<8xf32> to vector<8x1xf32>
    %c0_1 = arith.constant 0 : index
    %c0_2 = arith.constant 0 : index
    %3 = vector.load %arg2[%c0_1, %c0_2] : memref<8x32xf32, #tpu.memory_space<vmem>>, vector<8x32xf32>
    %cst_3 = arith.constant dense<0.000000e+00> : vector<8xf32>
    %4 = vector.multi_reduction <add>, %3, %cst_3 [1] : vector<8x32xf32> to vector<8xf32>
    %5 = vector.shape_cast %4 : vector<8xf32> to vector<8x1xf32>
    %c0_4 = arith.constant 0 : index
    %c0_5 = arith.constant 0 : index
    %6 = vector.load %arg1[%c0_4, %c0_5] : memref<8x32xf32, #tpu.memory_space<vmem>>, vector<8x32xf32>
    %7 = math.log %6 : vector<8x32xf32>
    %cst_6 = arith.constant 2.000000e+00 : f32
    %8 = math.log %cst_6 : f32
    %9 = vector.broadcast %8 : f32 to vector<8x32xf32>
    %10 = arith.divf %7, %9 : vector<8x32xf32>
    %11 = arith.mulf %6, %10 : vector<8x32xf32>
    %cst_7 = arith.constant dense<0.000000e+00> : vector<8xf32>
    %12 = vector.multi_reduction <add>, %11, %cst_7 [1] : vector<8x32xf32> to vector<8xf32>
    %13 = vector.shape_cast %12 : vector<8xf32> to vector<8x1xf32>
    %c0_8 = arith.constant 0 : index
    %c0_9 = arith.constant 0 : index
    %14 = vector.load %arg2[%c0_8, %c0_9] : memref<8x32xf32, #tpu.memory_space<vmem>>, vector<8x32xf32>
    %15 = math.log %14 : vector<8x32xf32>
    %cst_10 = arith.constant 2.000000e+00 : f32
    %16 = math.log %cst_10 : f32
    %17 = vector.broadcast %16 : f32 to vector<8x32xf32>
    %18 = arith.divf %15, %17 : vector<8x32xf32>
    %19 = arith.mulf %14, %18 : vector<8x32xf32>
    %cst_11 = arith.constant dense<0.000000e+00> : vector<8xf32>
    %20 = vector.multi_reduction <add>, %19, %cst_11 [1] : vector<8x32xf32> to vector<8xf32>
    %21 = vector.shape_cast %20 : vector<8xf32> to vector<8x1xf32>
    %22 = arith.mulf %2, %5 : vector<8x1xf32>
    %23 = math.log %22 : vector<8x1xf32>
    %cst_12 = arith.constant 2.000000e+00 : f32
    %24 = math.log %cst_12 : f32
    %25 = vector.broadcast %24 : f32 to vector<8x1xf32>
    %26 = arith.divf %23, %25 : vector<8x1xf32>
    %27 = arith.divf %13, %2 : vector<8x1xf32>
    %28 = arith.subf %26, %27 : vector<8x1xf32>
    %29 = arith.divf %21, %5 : vector<8x1xf32>
    %30 = arith.subf %28, %29 : vector<8x1xf32>
    %cst_13 = arith.constant 5.000000e-01 : f32
    %31 = vector.broadcast %cst_13 : f32 to vector<8x1xf32>
    %32 = arith.mulf %31, %30 : vector<8x1xf32>
    %c0_14 = arith.constant 0 : index
    %c0_15 = arith.constant 0 : index
    %33 = vector.load %arg3[%c0_14, %c0_15] : memref<8x1xf32, #tpu.memory_space<vmem>>, vector<8x1xf32>
    tpu.vector_store %arg3[%c0_14, %c0_15], %32 {strides = array<i32>} : memref<8x1xf32, #tpu.memory_space<vmem>>, vector<8x1xf32>,
    return
  }
  func.func @transform_0(%arg0: i32) -> (i32, i32) {
    %c0_i32 = arith.constant 0 : i32
    %c0_i32_0 = arith.constant 0 : i32
    return %arg0, %c0_i32 : i32, i32
  }
  func.func @transform_1(%arg0: i32) -> (i32, i32) {
    %c0_i32 = arith.constant 0 : i32
    %c0_i32_0 = arith.constant 0 : i32
    return %arg0, %c0_i32 : i32, i32
  }
  func.func @transform_2(%arg0: i32) -> (i32, i32) {
    %c0_i32 = arith.constant 0 : i32
    %c0_i32_0 = arith.constant 0 : i32
    return %arg0, %c0_i32 : i32, i32
  }
}

</mosaic_0001>

<bundles_post_ra>
// kernel: tpu_custom_call.1
= control target key start
LH: loop header
LB: loop body
LE: loop exit
PB: predicated region body
PF: predicated region fallthrough
CT: control target
= control target key end

     0   :  { %7 = vsyncpa [#allocation3], 0  ;;  %s164_s0 = inlined_call_operand.hbm [shape: f32[8,32], index: 0, kind: input, shape index: {}]   ;;  %s165_s1 = inlined_call_operand.hbm [shape: f32[8,32], index: 1, kind: input, shape index: {}]   ;;  %s166_s2 = inlined_call_operand.vmem [shape: f32[8,1], index: 2, kind: output, shape index: {}]  }
   0x1   :  { %8 = vsyncpa [#allocation5], 0  ;;  %s134_s9 = smov [#allocation2]   ;;  %s135_s11 = smov [#allocation4]  }
   0x2   :  { %s15_s10 = sshll.u32 %s134_s9, 4  ;;  %s25_s12 = sshll.u32 %s135_s11, 4  ;;  %s16_s10 = int_to_ptr.vmem [resolvable:$true] %s15_s10  ;;  %s26_s12 = int_to_ptr.vmem [resolvable:$true] %s25_s12 }
   0x3   :  { %s98_s13 = scalar_lea.vmem %s16_s10, 128  ;;  %p103_p1 = scmp.lt.s32.totalorder %s16_s10, %s16_s10 }
   0x4   :  { %p99_p0 = scmp.ne.s32.totalorder %s16_s10, %s98_s13  ;;  %p104_p2 = scmp.lt.s32.totalorder %s98_s13, %s98_s13 }
   0x6   :  { %p105_p3 = por %p104_p2, %p103_p1 }
   0x8   :  { %p106_p4 = pnand %p105_p3, %p99_p0 }
   0xa   :  { %109 = shalt.err (!%p106_p4)
}
   0xb   :  { %18 = dma.hbm_to_vmem [thread:$0]  %s164_s0, 128, %s16_s10, [#allocation3]  }
   0xc   :  { %s118_s16 = scalar_lea.vmem %s26_s12, 128  ;;  %p123_p6 = scmp.lt.s32.totalorder %s26_s12, %s26_s12 }
   0xd   :  { %p119_p5 = scmp.ne.s32.totalorder %s26_s12, %s118_s16  ;;  %p124_p7 = scmp.lt.s32.totalorder %s118_s16, %s118_s16 }
   0xf   :  { %p125_p8 = por %p124_p7, %p123_p6 }
  0x11   :  { %p126_p9 = pnand %p125_p8, %p119_p5 }
  0x13   :  { %129 = shalt.err (!%p126_p9)
}
  0x14   :  { %28 = dma.hbm_to_vmem [thread:$0]  %s165_s1, 128, %s26_s12, [#allocation5]  }
  0x15   :  { %130 = dma.done.wait [#allocation3], 128  }
  0x16   :  { %131 = vsyncadd [#allocation3], 4294967168 }
  0x17   :  { %132 = dma.done.wait [#allocation5], 128  }
  0x18   :  { %133 = vsyncadd [#allocation5], 4294967168  ;;  %vm36_vm0 = vcmask 261120   ;;  %v35_v0 = vld [vmem:[#allocation2] sm:$0xff]  ;;  %v40_v1 = vld [vmem:[#allocation4] sm:$0xff]  ;;  %vm70_vm1 = vcmask 7168  }
  0x19   :  { %v37_v2 = vsel %vm36_vm0, %v35_v0, 0.0  ;;  %80 = vlog2.f32 %v35_v0  ;;  %v41_v3 = vsel %vm36_vm0, %v40_v1, 0.0 }
  0x1a   :  { %38 = vadd.xlane.f32.xlu0 %v37_v2  ;;  %82 = vlog2.f32 %v40_v1 }
  0x1e   :  { %42 = vadd.xlane.f32.xlu0 %v41_v3 }
  0x26   :  { %v81_v4 = vpop.eup %80 }
  0x27   :  { %v83_v5 = vpop.eup %82  ;;  %v45_v6 = vmul.f32 0.6931472, %v81_v4 }
  0x28   :  { %v53_v7 = vmul.f32 0.6931472, %v83_v5 }
  0x29   :  { %v47_v8 = vmul.f32 1.442695, %v45_v6 }
  0x2a   :  { %v54_v9 = vmul.f32 1.442695, %v53_v7 }
  0x2b   :  { %v48_v10 = vmul.f32 %v47_v8, %v35_v0 }
  0x2c   :  { %v55_v11 = vmul.f32 %v54_v9, %v40_v1 }
  0x2d   :  { %v49_v12 = vsel %vm36_vm0, %v48_v10, 0.0 }
  0x2e   :  { %50 = vadd.xlane.f32.xlu1 %v49_v12  ;;  %v56_v13 = vsel %vm36_vm0, %v55_v11, 0.0 }
  0x32   :  { %57 = vadd.xlane.f32.xlu1 %v56_v13 }
  0xa3   :  { %v39_v14 = vpop.xlane.xlu0 %38 }
  0xa7   :  { %v43_v15 = vpop.xlane.xlu0 %42 }
  0xa8   :  { %v59_v16 = vmul.f32 %v43_v15, %v39_v14 }
  0xaa   :  { %84 = vlog2.f32 %v59_v16 }
  0xab   :  { %86 = vrcp.f32 %v39_v14 }
  0xac   :  { %88 = vrcp.f32 %v43_v15 }
  0xb7   :  { %v85_v17 = vpop.eup %84  ;;  %v51_v18 = vpop.xlane.xlu1 %50 }
  0xb8   :  { %v61_v19 = vmul.f32 0.6931472, %v85_v17  ;;  %v87_v20 = vpop.eup %86 }
  0xb9   :  { %v64_v22 = vmul.f32 %v87_v20, %v51_v18  ;;  %v89_v23 = vpop.eup %88 }
  0xba   :  { %v62_v21 = vmul.f32 1.442695, %v61_v19 }
  0xbb   :  { %v58_v24 = vpop.xlane.xlu1 %57 }
  0xbc   :  { %v65_v25 = vsub.f32 %v62_v21, %v64_v22  ;;  %v67_v26 = vmul.f32 %v89_v23, %v58_v24 }
  0xbe   :  { %v68_v27 = vsub.f32 %v65_v25, %v67_v26 }
  0xc0   :  { %v69_v28 = vmul.f32 0.5, %v68_v27 }
  0xc2   :  { %71 = vst.msk [vmem:[%s166_s2] sm:$0xff] %vm70_vm1, %v69_v28 }
  0xc3   :  { %76 = vsyncpa [#allocation3], 1 }
  0xc4   :  { %77 = vsyncpa [#allocation5], 1 }

</bundles_post_ra>
